<compile_context>
chip_gen: v7x
topology: tpu7x:2x2x1
jax: 0.10.0
libtpu: 0.0.40
codegen_flags: <defaults>
</compile_context>

<pallas_src>
import jax
import jax.numpy as jnp
from jax import lax
from jax.experimental import pallas as pl
from jax.experimental.pallas import tpu as pltpu


def _sigmoid(x):
    # exp goes to the EUP slot; exact divide keeps full f32 accuracy.
    return 1.0 / (1.0 + jnp.exp(-x))


# ---------------------------------------------------------------------------
# Fused kernel: one batch element per grid step, lane-dense (C, H*W) layout.
# ---------------------------------------------------------------------------
def _fused_kernel(x_ref, w1_ref, b1_ref, w2_ref, b2_ref, a_ref, cb_ref,
                  out_ref):
    x = x_ref[0]                                            # (C, HW) f32
    C, HW = x.shape

    # ---- channel attention: sigmoid(2 * MLP(avgpool(x))) -------------------
    pooled = jnp.sum(x, axis=1, keepdims=True) * (1.0 / HW)           # (C, 1)
    pooled_b = jnp.broadcast_to(pooled, (C, HW))                      # (C, HW)
    h = jnp.dot(w1_ref[...], pooled_b,
                preferred_element_type=jnp.float32) + b1_ref[...]     # (mid, HW)
    h = jnp.maximum(h, 0.0)
    ca = jnp.dot(w2_ref[...], h,
                 preferred_element_type=jnp.float32) + b2_ref[...]    # (C, HW)
    ca = _sigmoid(2.0 * ca)                                           # (C, HW)

    # ---- spatial attention: sigmoid(conv7x7([mean_c, max_c])) * conv -------
    mean_c = jnp.mean(x, axis=0, keepdims=True)                       # (1, HW)
    max_c = jnp.max(x, axis=0, keepdims=True)                         # (1, HW)
    conv = (jnp.dot(mean_c, a_ref[0], preferred_element_type=jnp.float32)
            + jnp.dot(max_c, a_ref[1], preferred_element_type=jnp.float32)
            + cb_ref[0])                                              # (1, HW)
    sa = _sigmoid(conv) * conv                                        # (1, HW)

    # ---- combine: broadcast add, single unmasked lane-dense store ----------
    out_ref[0] = ca + sa                                              # (C, HW)


# ---------------------------------------------------------------------------
# Weight preprocessing: 7x7 "same" conv (padding=3) as a dense matrix so the
# in-kernel conv is one MXU matmul per input plane.  Depends only on weights.
# ---------------------------------------------------------------------------
def _build_conv_matrix(cw, H, W):
    # cw: (1, 2, K, K) OIHW.  Returns A: (2, H*W, H*W) with
    #   conv(feat)[p_out] = sum_c feat[c].reshape(-1) @ A[c, :, p_out]
    K = cw.shape[-1]
    pad = K // 2
    w = cw[0]                                                   # (2, K, K)
    dy = jnp.arange(H)[:, None] - jnp.arange(H)[None, :] + pad  # (H, H): [yi, yo]
    dx = jnp.arange(W)[:, None] - jnp.arange(W)[None, :] + pad  # (W, W): [xi, xo]
    vy = (dy >= 0) & (dy < K)
    vx = (dx >= 0) & (dx < K)
    ky = jnp.clip(dy, 0, K - 1)
    kx = jnp.clip(dx, 0, K - 1)
    a = w[:, ky[:, None, :, None], kx[None, :, None, :]]        # (2, H, W, H, W)
    mask = vy[:, None, :, None] & vx[None, :, None, :]          # (H, W, H, W)
    a = a * mask[None].astype(cw.dtype)
    return a.reshape(2, H * W, H * W)


# ---------------------------------------------------------------------------
# Wrapper
# ---------------------------------------------------------------------------
@jax.jit
def test_model_forward(x, params):
    w1, b1, w2, b2, cw, cb = params
    B, C, H, W = x.shape
    mid = w1.shape[0]
    HW = H * W

    x2d = x.astype(jnp.float32).reshape(B, C, HW)       # free metadata reshape
    a = _build_conv_matrix(cw.astype(jnp.float32), H, W)  # (2, HW, HW)
    w1f = w1.astype(jnp.float32)                         # (mid, C)
    w2f = w2.astype(jnp.float32)                         # (C, mid)
    b1c = b1.astype(jnp.float32).reshape(mid, 1)
    b2c = b2.astype(jnp.float32).reshape(C, 1)
    cbf = cb.astype(jnp.float32)                         # (1,)

    out2d = pl.pallas_call(
        _fused_kernel,
        out_shape=jax.ShapeDtypeStruct((B, C, HW), jnp.float32),
        grid=(B,),
        in_specs=[
            pl.BlockSpec((1, C, HW), lambda b: (b, 0, 0)),      # x
            pl.BlockSpec((mid, C), lambda b: (0, 0)),           # W1
            pl.BlockSpec((mid, 1), lambda b: (0, 0)),           # b1
            pl.BlockSpec((C, mid), lambda b: (0, 0)),           # W2
            pl.BlockSpec((C, 1), lambda b: (0, 0)),             # b2
            pl.BlockSpec((2, HW, HW), lambda b: (0, 0, 0)),     # conv matrix A
            pl.BlockSpec(memory_space=pltpu.MemorySpace.SMEM),  # conv bias
        ],
        out_specs=pl.BlockSpec((1, C, HW), lambda b: (b, 0, 0)),
        compiler_params=pltpu.CompilerParams(
            dimension_semantics=("parallel",)),
    )(x2d, w1f, b1c, w2f, b2c, a, cbf)

    return out2d.reshape(B, C, H, W)


# ---------------------------------------------------------------------------
# Pure-JAX reference (mirrors the PyTorch forward)
# ---------------------------------------------------------------------------
def _reference(x, params):
    w1, b1, w2, b2, cw, cb = params
    pooled = jnp.mean(x, axis=(2, 3))                               # (B, C)
    h = jax.nn.relu(pooled @ w1.T + b1)
    ca = jax.nn.sigmoid(2.0 * (h @ w2.T + b2))                      # (B, C)
    avg = jnp.mean(x, axis=1, keepdims=True)
    mx = jnp.max(x, axis=1, keepdims=True)
    feat = jnp.concatenate([avg, mx], axis=1)                       # (B, 2, H, W)
    conv = lax.conv_general_dilated(
        feat, cw, window_strides=(1, 1), padding=((3, 3), (3, 3)),
        dimension_numbers=("NCHW", "OIHW", "NCHW"),
        precision=lax.Precision.HIGHEST) + cb.reshape(1, 1, 1, 1)
    sa = jax.nn.sigmoid(conv) * conv                                # (B, 1, H, W)
    return ca[:, :, None, None] + sa


if __name__ == "__main__":
    key = jax.random.PRNGKey(0)
    B, C, H, W = 2, 32, 16, 16
    reduction = 16
    mid = C // reduction
    ks = jax.random.split(key, 7)

    x = jax.random.normal(ks[0], (B, C, H, W), jnp.float32)
    w1 = jax.random.normal(ks[1], (mid, C), jnp.float32) * 0.2
    b1 = jax.random.normal(ks[2], (mid,), jnp.float32) * 0.1
    w2 = jax.random.normal(ks[3], (C, mid), jnp.float32) * 0.2
    b2 = jax.random.normal(ks[4], (C,), jnp.float32) * 0.1
    cw = jax.random.normal(ks[5], (1, 2, 7, 7), jnp.float32) * 0.1
    cb = jax.random.normal(ks[6], (1,), jnp.float32) * 0.1
    params = (w1, b1, w2, b2, cw, cb)

    out = jax.block_until_ready(test_model_forward(x, params))
    ref = jax.block_until_ready(_reference(x, params))

    assert out.shape == (B, C, H, W), out.shape
    err = float(jnp.max(jnp.abs(out - ref)))
    # Tolerance allows for possible multi-pass bf16 MXU rounding of the
    # f32 conv-as-matmul vs XLA's convolution.
    assert err < 2e-2, f"max abs err {err}"
    print("KERNEL_OK")
</pallas_src>

<mosaic_0001>
module attributes {stable_mosaic.version = 11 : i64} {
  func.func @_fused_kernel(%arg0: i32, %arg1: memref<1x32x256xf32, #tpu.memory_space<vmem>>, %arg2: memref<2x32xf32, #tpu.memory_space<vmem>>, %arg3: memref<2x1xf32, #tpu.memory_space<vmem>>, %arg4: memref<32x2xf32, #tpu.memory_space<vmem>>, %arg5: memref<32x1xf32, #tpu.memory_space<vmem>>, %arg6: memref<2x256x256xf32, #tpu.memory_space<vmem>>, %arg7: memref<1xf32, #tpu.memory_space<smem>>, %arg8: memref<1x32x256xf32, #tpu.memory_space<vmem>>) attributes {dimension_semantics = [#tpu.dimension_semantics<parallel>], iteration_bounds = array<i64: 2>, scalar_prefetch = 0 : i64, scratch_operands = 0 : i64, tpu.core_type = #tpu.core_type<tc>, window_params = [{transform_indices = @transform_0, window_bounds = array<i64: 1, 32, 256>}, {pipeline_mode = #tpu.pipeline_mode<synchronous>, transform_indices = @transform_1, window_bounds = array<i64: 2, 32>}, {pipeline_mode = #tpu.pipeline_mode<synchronous>, transform_indices = @transform_2, window_bounds = array<i64: 2, 1>}, {pipeline_mode = #tpu.pipeline_mode<synchronous>, transform_indices = @transform_3, window_bounds = array<i64: 32, 2>}, {pipeline_mode = #tpu.pipeline_mode<synchronous>, transform_indices = @transform_4, window_bounds = array<i64: 32, 1>}, {pipeline_mode = #tpu.pipeline_mode<synchronous>, transform_indices = @transform_5, window_bounds = array<i64: 2, 256, 256>}, {transform_indices = @transform_6, window_bounds = array<i64: 1>}, {transform_indices = @transform_7, window_bounds = array<i64: 1, 32, 256>}]} {
    %c0 = arith.constant 0 : index
    %c0_0 = arith.constant 0 : index
    %c0_1 = arith.constant 0 : index
    %0 = vector.load %arg1[%c0, %c0_0, %c0_1] : memref<1x32x256xf32, #tpu.memory_space<vmem>>, vector<1x32x256xf32>
    %1 = vector.shape_cast %0 : vector<1x32x256xf32> to vector<32x256xf32>
    %cst = arith.constant dense<0.000000e+00> : vector<32xf32>
    %2 = vector.multi_reduction <add>, %1, %cst [1] : vector<32x256xf32> to vector<32xf32>
    %3 = vector.shape_cast %2 : vector<32xf32> to vector<32x1xf32>
    %cst_2 = arith.constant 3.906250e-03 : f32
    %4 = vector.broadcast %cst_2 : f32 to vector<32x1xf32>
    %5 = arith.mulf %3, %4 : vector<32x1xf32>
    %6 = vector.shape_cast %5 : vector<32x1xf32> to vector<32x1xf32>
    %7 = vector.broadcast %6 : vector<32x1xf32> to vector<32x256xf32>
    %c0_3 = arith.constant 0 : index
    %c0_4 = arith.constant 0 : index
    %8 = vector.load %arg2[%c0_3, %c0_4] : memref<2x32xf32, #tpu.memory_space<vmem>>, vector<2x32xf32>
    %cst_5 = arith.constant dense<0.000000e+00> : vector<2x256xf32>
    %9 = tpu.matmul %8, %7, %cst_5 {dimension_numbers = #tpu.dot_dimension_numbers<[1], [0], [0], [1], [0, 0, 1, 1], [], []>} : vector<2x32xf32>, vector<32x256xf32>, vector<2x256xf32> -> vector<2x256xf32>
    %c0_6 = arith.constant 0 : index
    %c0_7 = arith.constant 0 : index
    %10 = vector.load %arg3[%c0_6, %c0_7] : memref<2x1xf32, #tpu.memory_space<vmem>>, vector<2x1xf32>
    %11 = vector.broadcast %10 : vector<2x1xf32> to vector<2x256xf32>
    %12 = arith.addf %9, %11 : vector<2x256xf32>
    %cst_8 = arith.constant 0.000000e+00 : f32
    %13 = vector.broadcast %cst_8 : f32 to vector<2x256xf32>
    %14 = arith.maximumf %12, %13 : vector<2x256xf32>
    %c0_9 = arith.constant 0 : index
    %c0_10 = arith.constant 0 : index
    %15 = vector.load %arg4[%c0_9, %c0_10] : memref<32x2xf32, #tpu.memory_space<vmem>>, vector<32x2xf32>
    %cst_11 = arith.constant dense<0.000000e+00> : vector<32x256xf32>
    %16 = tpu.matmul %15, %14, %cst_11 {dimension_numbers = #tpu.dot_dimension_numbers<[1], [0], [0], [1], [0, 0, 1, 1], [], []>} : vector<32x2xf32>, vector<2x256xf32>, vector<32x256xf32> -> vector<32x256xf32>
    %c0_12 = arith.constant 0 : index
    %c0_13 = arith.constant 0 : index
    %17 = vector.load %arg5[%c0_12, %c0_13] : memref<32x1xf32, #tpu.memory_space<vmem>>, vector<32x1xf32>
    %18 = vector.broadcast %17 : vector<32x1xf32> to vector<32x256xf32>
    %19 = arith.addf %16, %18 : vector<32x256xf32>
    %cst_14 = arith.constant 2.000000e+00 : f32
    %20 = vector.broadcast %cst_14 : f32 to vector<32x256xf32>
    %21 = arith.mulf %20, %19 : vector<32x256xf32>
    %cst_15 = arith.constant 0.000000e+00 : f32
    %22 = vector.broadcast %cst_15 : f32 to vector<32x256xf32>
    %23 = arith.subf %22, %21 : vector<32x256xf32>
    %24 = math.exp %23 : vector<32x256xf32>
    %cst_16 = arith.constant 1.000000e+00 : f32
    %25 = vector.broadcast %cst_16 : f32 to vector<32x256xf32>
    %26 = arith.addf %25, %24 : vector<32x256xf32>
    %cst_17 = arith.constant 1.000000e+00 : f32
    %27 = vector.broadcast %cst_17 : f32 to vector<32x256xf32>
    %28 = arith.divf %27, %26 : vector<32x256xf32>
    %cst_18 = arith.constant dense<0.000000e+00> : vector<256xf32>
    %29 = vector.multi_reduction <add>, %1, %cst_18 [0] : vector<32x256xf32> to vector<256xf32>
    %30 = vector.shape_cast %29 : vector<256xf32> to vector<1x256xf32>
    %cst_19 = arith.constant 3.200000e+01 : f32
    %31 = vector.broadcast %cst_19 : f32 to vector<1x256xf32>
    %32 = arith.divf %30, %31 : vector<1x256xf32>
    %cst_20 = arith.constant dense<0xFF800000> : vector<256xf32>
    %33 = vector.multi_reduction <maximumf>, %1, %cst_20 [0] : vector<32x256xf32> to vector<256xf32>
    %34 = vector.shape_cast %33 : vector<256xf32> to vector<1x256xf32>
    %c0_21 = arith.constant 0 : index
    %c0_22 = arith.constant 0 : index
    %c0_23 = arith.constant 0 : index
    %35 = vector.load %arg6[%c0_21, %c0_22, %c0_23] : memref<2x256x256xf32, #tpu.memory_space<vmem>>, vector<1x256x256xf32>
    %36 = vector.shape_cast %35 : vector<1x256x256xf32> to vector<256x256xf32>
    %cst_24 = arith.constant dense<0.000000e+00> : vector<1x256xf32>
    %37 = tpu.matmul %32, %36, %cst_24 {dimension_numbers = #tpu.dot_dimension_numbers<[1], [0], [0], [1], [0, 0, 1, 1], [], []>} : vector<1x256xf32>, vector<256x256xf32>, vector<1x256xf32> -> vector<1x256xf32>
    %c1 = arith.constant 1 : index
    %c0_25 = arith.constant 0 : index
    %c0_26 = arith.constant 0 : index
    %38 = vector.load %arg6[%c1, %c0_25, %c0_26] : memref<2x256x256xf32, #tpu.memory_space<vmem>>, vector<1x256x256xf32>
    %39 = vector.shape_cast %38 : vector<1x256x256xf32> to vector<256x256xf32>
    %cst_27 = arith.constant dense<0.000000e+00> : vector<1x256xf32>
    %40 = tpu.matmul %34, %39, %cst_27 {dimension_numbers = #tpu.dot_dimension_numbers<[1], [0], [0], [1], [0, 0, 1, 1], [], []>} : vector<1x256xf32>, vector<256x256xf32>, vector<1x256xf32> -> vector<1x256xf32>
    %41 = arith.addf %37, %40 : vector<1x256xf32>
    %c0_28 = arith.constant 0 : index
    %42 = memref.load %arg7[%c0_28] : memref<1xf32, #tpu.memory_space<smem>>
    %43 = vector.broadcast %42 : f32 to vector<1x256xf32>
    %44 = arith.addf %41, %43 : vector<1x256xf32>
    %cst_29 = arith.constant 0.000000e+00 : f32
    %45 = vector.broadcast %cst_29 : f32 to vector<1x256xf32>
    %46 = arith.subf %45, %44 : vector<1x256xf32>
    %47 = math.exp %46 : vector<1x256xf32>
    %cst_30 = arith.constant 1.000000e+00 : f32
    %48 = vector.broadcast %cst_30 : f32 to vector<1x256xf32>
    %49 = arith.addf %48, %47 : vector<1x256xf32>
    %cst_31 = arith.constant 1.000000e+00 : f32
    %50 = vector.broadcast %cst_31 : f32 to vector<1x256xf32>
    %51 = arith.divf %50, %49 : vector<1x256xf32>
    %52 = arith.mulf %51, %44 : vector<1x256xf32>
    %53 = vector.broadcast %52 : vector<1x256xf32> to vector<32x256xf32>
    %54 = arith.addf %28, %53 : vector<32x256xf32>
    %c0_32 = arith.constant 0 : index
    %c0_33 = arith.constant 0 : index
    %c0_34 = arith.constant 0 : index
    %55 = vector.load %arg8[%c0_32, %c0_33, %c0_34] : memref<1x32x256xf32, #tpu.memory_space<vmem>>, vector<1x32x256xf32>
    %56 = vector.shape_cast %55 : vector<1x32x256xf32> to vector<32x256xf32>
    %57 = vector.shape_cast %54 : vector<32x256xf32> to vector<1x32x256xf32>
    tpu.vector_store %arg8[%c0_32, %c0_33, %c0_34], %57 {strides = array<i32>} : memref<1x32x256xf32, #tpu.memory_space<vmem>>, vector<1x32x256xf32>,
    return
  }
  func.func @transform_0(%arg0: i32) -> (i32, i32, i32) {
    %c0_i32 = arith.constant 0 : i32
    %c0_i32_0 = arith.constant 0 : i32
    %c0_i32_1 = arith.constant 0 : i32
    return %arg0, %c0_i32, %c0_i32_0 : i32, i32, i32
  }
  func.func @transform_1(%arg0: i32) -> (i32, i32) {
    %c0_i32 = arith.constant 0 : i32
    %c0_i32_0 = arith.constant 0 : i32
    %c0_i32_1 = arith.constant 0 : i32
    return %c0_i32, %c0_i32_0 : i32, i32
  }
  func.func @transform_2(%arg0: i32) -> (i32, i32) {
    %c0_i32 = arith.constant 0 : i32
    %c0_i32_0 = arith.constant 0 : i32
    %c0_i32_1 = arith.constant 0 : i32
    return %c0_i32, %c0_i32_0 : i32, i32
  }
  func.func @transform_3(%arg0: i32) -> (i32, i32) {
    %c0_i32 = arith.constant 0 : i32
    %c0_i32_0 = arith.constant 0 : i32
    %c0_i32_1 = arith.constant 0 : i32
    return %c0_i32, %c0_i32_0 : i32, i32
  }
  func.func @transform_4(%arg0: i32) -> (i32, i32) {
    %c0_i32 = arith.constant 0 : i32
    %c0_i32_0 = arith.constant 0 : i32
    %c0_i32_1 = arith.constant 0 : i32
    return %c0_i32, %c0_i32_0 : i32, i32
  }
  func.func @transform_5(%arg0: i32) -> (i32, i32, i32) {
    %c0_i32 = arith.constant 0 : i32
    %c0_i32_0 = arith.constant 0 : i32
    %c0_i32_1 = arith.constant 0 : i32
    %c0_i32_2 = arith.constant 0 : i32
    return %c0_i32, %c0_i32_0, %c0_i32_1 : i32, i32, i32
  }
  func.func @transform_6(%arg0: i32) -> i32 {
    %c0_i32 = arith.constant 0 : i32
    %c0_i32_0 = arith.constant 0 : i32
    return %c0_i32 : i32
  }
  func.func @transform_7(%arg0: i32) -> (i32, i32, i32) {
    %c0_i32 = arith.constant 0 : i32
    %c0_i32_0 = arith.constant 0 : i32
    %c0_i32_1 = arith.constant 0 : i32
    return %arg0, %c0_i32, %c0_i32_0 : i32, i32, i32
  }
}

</mosaic_0001>

<bundles_post_ra>
// kernel: test_model_forward.1
= control target key start
LH: loop header
LB: loop body
LE: loop exit
PB: predicated region body
PF: predicated region fallthrough
CT: control target
= control target key end

     0   :  { %s1315_s26 = smov 0   ;;  %s1781_s0 = inlined_call_operand.vmem [shape: f32[2,32,256], index: 0, kind: input, shape index: {}]   ;;  %s1782_s1 = inlined_call_operand.vmem [shape: f32[2,32], index: 1, kind: input, shape index: {}]   ;;  %s1783_s2 = inlined_call_operand.vmem [shape: f32[2,1], index: 2, kind: input, shape index: {}]   ;;  %s1784_s3 = inlined_call_operand.vmem [shape: f32[32,2], index: 3, kind: input, shape index: {}]   ;;  %s1785_s4 = inlined_call_operand.vmem [shape: f32[32,1], index: 4, kind: input, shape index: {}]   ;;  %s1786_s5 = inlined_call_operand.vmem [shape: f32[2,256,256], index: 5, kind: input, shape index: {}]   ;;  %s1787_s6 = inlined_call_operand.<no memory space> [shape: f32[1], index: 6, kind: input, shape index: {}]   ;;  %s1788_s7 = inlined_call_operand.vmem [shape: f32[2,32,256], index: 7, kind: output, shape index: {}]  }
   0x1   :  { %12 = sst [smem:[#allocation2]] %s1787_s6 }
   0x2 LB: > { %s988_s27 = sadd.s32 4294967295, %s1268_s26   ;;  %p992_p0 = scmp.ge.s32.totalorder %s1268_s26, 1  ;;  %s1268_s26 = sphi %s1315_s26, %s18_s26  }
   0x3   : > { %p238_p1 = scmp.lt.s32.totalorder %s1268_s26, 3 }
   0x5   : > { %p239_p2 = pnand %p992_p0, %p238_p1 }
   0x6   : > { %p270_p3 = scmp.lt.s32.totalorder (!%p239_p2), %s988_s27, 1  ;;  %v1270_v24 = vmov (!%p239_p2), 0.0   ;;  %v305_v25 = vld [vmem:[%s1783_s2] sm:$0x3] (!%p239_p2)  ;;  %v1271_v26 = vmov (!%p239_p2), 0   ;;  %vm311_vm0 = vcmask (!%p239_p2), 261120  }
   0x7   : > { %242 = sbr.rel (%p239_p2) target bundleno = 716 (0x2cc), region = 48  ;;  %379 = vmatprep.mubr.f32.mxu0 (!%p239_p2), %v1270_v24  ;;  %500 = vmatprep.mubr.f32.mxu1 (!%p239_p2), %v1270_v24  ;;  %v304_v37 = vld [vmem:[%s1782_s1] sm:$0x3] (!%p239_p2)  ;;  %v1005_v38 = vld [vmem:[%s1786_s5 + $0x208] sm:$0xff] (!%p239_p2)  ;;  %v1007_v39 = vld [vmem:[%s1786_s5 + $0x218] sm:$0xff] (!%p239_p2)  ;;  %vm429_vm1 = vcmask (!%p239_p2), 1041408  }
   0x8   : > { %1220 = vset.pattern.permute.xlu0 (!%p239_p2), %v1271_v26  ;;  %1221 = vset.pattern.permute.xlu1 (!%p239_p2), %v1271_v26  ;;  %v1080_v40 = vpack.c.bf16 (!%p239_p2), %v1007_v39, %v1005_v38  ;;  %v1004_v41 = vld [vmem:[%s1786_s5 + $0x200] sm:$0xff] (!%p239_p2)  ;;  %v1006_v42 = vld [vmem:[%s1786_s5 + $0x210] sm:$0xff] (!%p239_p2)  ;;  %v1009_v44 = vld [vmem:[%s1786_s5 + $0x228] sm:$0xff] (!%p239_p2)  ;;  %vm416_vm2 = vcmask (!%p239_p2), 15360   ;;  %s1770_s11 = sld [smem:[#allocation2]] (!%p239_p2) }
   0x9   : > { %v1082_v43 = vpack.c.bf16 (!%p239_p2), %v1006_v42, %v1004_v41  ;;  %v1011_v45 = vld [vmem:[%s1786_s5 + $0x238] sm:$0xff] (!%p239_p2)  ;;  %v1008_v47 = vld [vmem:[%s1786_s5 + $0x220] sm:$0xff] (!%p239_p2)  ;;  %v1010_v48 = vld [vmem:[%s1786_s5 + $0x230] sm:$0xff] (!%p239_p2) }
   0xa   : > { %v1084_v46 = vpack.c.bf16 (!%p239_p2), %v1011_v45, %v1009_v44  ;;  %v1086_v49 = vpack.c.bf16 (!%p239_p2), %v1010_v48, %v1008_v47  ;;  %v1013_v50 = vld [vmem:[%s1786_s5 + $0x248] sm:$0xff] (!%p239_p2)  ;;  %v1015_v51 = vld [vmem:[%s1786_s5 + $0x258] sm:$0xff] (!%p239_p2)  ;;  %v1012_v53 = vld [vmem:[%s1786_s5 + $0x240] sm:$0xff] (!%p239_p2) }
   0xb   : > { %v1088_v52 = vpack.c.bf16 (!%p239_p2), %v1015_v51, %v1013_v50  ;;  %v1014_v54 = vld [vmem:[%s1786_s5 + $0x250] sm:$0xff] (!%p239_p2)  ;;  %v1017_v56 = vld [vmem:[%s1786_s5 + $0x268] sm:$0xff] (!%p239_p2)  ;;  %v1019_v57 = vld [vmem:[%s1786_s5 + $0x278] sm:$0xff] (!%p239_p2) }
   0xc   : > { %v1090_v55 = vpack.c.bf16 (!%p239_p2), %v1014_v54, %v1012_v53  ;;  %v1092_v58 = vpack.c.bf16 (!%p239_p2), %v1019_v57, %v1017_v56  ;;  %v1016_v59 = vld [vmem:[%s1786_s5 + $0x260] sm:$0xff] (!%p239_p2)  ;;  %v1018_v60 = vld [vmem:[%s1786_s5 + $0x270] sm:$0xff] (!%p239_p2)  ;;  %v1021_v62 = vld [vmem:[%s1786_s5 + $0x288] sm:$0xff] (!%p239_p2) }
   0xd   : > { %v1094_v61 = vpack.c.bf16 (!%p239_p2), %v1018_v60, %v1016_v59  ;;  %v1023_v63 = vld [vmem:[%s1786_s5 + $0x298] sm:$0xff] (!%p239_p2)  ;;  %v1045_v39 = vld [vmem:[%s1786_s5 + $0x348] sm:$0xff] (!%p239_p2)  ;;  %v1044_v42 = vld [vmem:[%s1786_s5 + $0x340] sm:$0xff] (!%p239_p2) }
   0xe   : > { %s1790_s27 = smov (!%p270_p3, %s988_s27), 1  ;;  %v1049_v45 = vld [vmem:[%s1786_s5 + $0x368] sm:$0xff]  ;;  %v1048_v48 = vld [vmem:[%s1786_s5 + $0x360] sm:$0xff]  ;;  %v1059_v59 = vld [vmem:[%s1786_s5 + $0x3b8] sm:$0xff] }
   0xf   : > { %s1070_s6 = sshll.u32 %s1790_s27, 6  ;;  %v1053_v51 = vld [vmem:[%s1786_s5 + $0x388] sm:$0xff]  ;;  %v1052_v54 = vld [vmem:[%s1786_s5 + $0x380] sm:$0xff] }
  0x10   : > { %s274_s30 = scalar_lea.vmem %s1781_s0, %s1070_s6  ;;  %s279_s14 = scalar_lea.vmem %s1788_s7, %s1070_s6 }
  0x11   : > { %v284_v0 = vld [vmem:[%s274_s30 + $0x20] sm:$0xff]  ;;  %v285_v1 = vld [vmem:[%s274_s30 + $0x28] sm:$0xff]  ;;  %v286_v6 = vld [vmem:[%s274_s30 + $0x30] sm:$0xff] }
  0x12   : > { %v280_v2 = vld [vmem:[%s274_s30] sm:$0xff]  ;;  %v294_v3 = vadd.f32 %v285_v1, %v284_v0  ;;  %v281_v4 = vld [vmem:[%s274_s30 + $0x8] sm:$0xff]  ;;  %v287_v7 = vld [vmem:[%s274_s30 + $0x38] sm:$0xff] }
  0x13   : > { %v602_v5 = vmax.f32 %v280_v2, %v284_v0  ;;  %v288_v8 = vadd.f32 %v281_v4, %v280_v2  ;;  %v611_v9 = vmax.f32 %v281_v4, %v285_v1  ;;  %v282_v10 = vld [vmem:[%s274_s30 + $0x10] sm:$0xff]  ;;  %v283_v11 = vld [vmem:[%s274_s30 + $0x18] sm:$0xff]  ;;  %v297_v12 = vadd.f32 %v287_v7, %v286_v6 }
  0x14   : > { %295 = vadd.xlane.f32.xlu1 %v294_v3  ;;  %v581_v13 = vadd.f32 %v282_v10, %v280_v2  ;;  %v590_v14 = vadd.f32 %v283_v11, %v281_v4  ;;  %v603_v15 = vmax.f32 %v282_v10, %v286_v6  ;;  %v291_v16 = vadd.f32 %v283_v11, %v282_v10  ;;  %v1022_v2 = vld [vmem:[%s1786_s5 + $0x290] sm:$0xff]  ;;  %v1025_v4 = vld [vmem:[%s1786_s5 + $0x2a8] sm:$0xff] }
  0x15   : > { %289 = vadd.xlane.f32.xlu0 %v288_v8  ;;  %v612_v17 = vmax.f32 %v283_v11, %v287_v7  ;;  %v1026_v8 = vld [vmem:[%s1786_s5 + $0x2b0] sm:$0xff]  ;;  %v1029_v10 = vld [vmem:[%s1786_s5 + $0x2c8] sm:$0xff]  ;;  %v1031_v11 = vld [vmem:[%s1786_s5 + $0x2d8] sm:$0xff] }
  0x16   : > { %v582_v18 = vadd.f32 %v581_v13, %v284_v0  ;;  %v591_v19 = vadd.f32 %v590_v14, %v285_v1  ;;  %v1331_v20 = vmax.f32 %v602_v5, %v603_v15  ;;  %v1096_v0 = vpack.c.bf16 %v1023_v63, %v1021_v62  ;;  %v1020_v1 = vld [vmem:[%s1786_s5 + $0x280] sm:$0xff]  ;;  %v1027_v5 = vld [vmem:[%s1786_s5 + $0x2b8] sm:$0xff]  ;;  %v1030_v14 = vld [vmem:[%s1786_s5 + $0x2d0] sm:$0xff] }
  0x17   : > { %v1333_v21 = vmax.f32 %v611_v9, %v612_v17  ;;  %v1098_v3 = vpack.c.bf16 %v1022_v2, %v1020_v1  ;;  %v1028_v13 = vld [vmem:[%s1786_s5 + $0x2c0] sm:$0xff]  ;;  %v1035_v17 = vld [vmem:[%s1786_s5 + $0x2f8] sm:$0xff]  ;;  %v1058_v62 = vld [vmem:[%s1786_s5 + $0x3b0] sm:$0xff] }
  0x18   : > { %298 = vadd.xlane.f32.xlu1 %v297_v12  ;;  %v1335_v22 = vadd.f32 %v582_v18, %v286_v6  ;;  %v1337_v23 = vadd.f32 %v591_v19, %v287_v7  ;;  %v1100_v6 = vpack.c.bf16 %v1027_v5, %v1025_v4  ;;  %v1024_v7 = vld [vmem:[%s1786_s5 + $0x2a0] sm:$0xff]  ;;  %v1104_v12 = vpack.c.bf16 %v1031_v11, %v1029_v10  ;;  %v1061_v2 = vld [vmem:[%s1786_s5 + $0x3c8] sm:$0xff] }
  0x19   : > { %292 = vadd.xlane.f32.xlu0 %v291_v16  ;;  %v1102_v9 = vpack.c.bf16 %v1026_v8, %v1024_v7  ;;  %v1106_v15 = vpack.c.bf16 %v1030_v14, %v1028_v13  ;;  %v1033_v16 = vld [vmem:[%s1786_s5 + $0x2e8] sm:$0xff]  ;;  %v1032_v19 = vld [vmem:[%s1786_s5 + $0x2e0] sm:$0xff]  ;;  %v605_v57 = vrot.slane %v1331_v20, 4  ;;  %v1066_v14 = vld [vmem:[%s1786_s5 + $0x3f0] sm:$0xff] }
  0x1a   : > { %v1108_v18 = vpack.c.bf16 %v1035_v17, %v1033_v16  ;;  %v1065_v10 = vld [vmem:[%s1786_s5 + $0x3e8] sm:$0xff]  ;;  %v1064_v13 = vld [vmem:[%s1786_s5 + $0x3e0] sm:$0xff] }
  0x1b   : > { %v606_v1 = vmax.f32 %v1331_v20, %v605_v57  ;;  %v1062_v20 = vld [vmem:[%s1786_s5 + $0x3d0] sm:$0xff]  ;;  %v1142_v16 = vpack.c.bf16 %v1066_v14, %v1064_v13  ;;  %v640_v13 = vld [vmem:[%s1786_s5 + $0xa0] sm:$0xff] }
  0x1c   : > { %v642_v14 = vld [vmem:[%s1786_s5 + $0xb0] sm:$0xff] }
  0x2f   : > { %308 = vperm.xlu0 %1220, %v305_v25   ;;  %v1034_v25 = vld [vmem:[%s1786_s5 + $0x2f0] sm:$0xff] }
  0x30   : > { %v1110_v26 = vpack.c.bf16 %v1034_v25, %v1032_v19 }
  0xa1   : > { %v296_v27 = vpop.xlane.xlu1 %295 }
  0xa2   : > { %v290_v28 = vpop.xlane.xlu0 %289  ;;  %v302_v31 = vmul.f32 0.00390625, %v296_v27  ;;  %v1037_v27 = vld [vmem:[%s1786_s5 + $0x308] sm:$0xff] }
  0xa3   : > { %v300_v32 = vmul.f32 0.00390625, %v290_v28  ;;  %v1039_v28 = vld [vmem:[%s1786_s5 + $0x318] sm:$0xff] }
  0xa5   : > { %v299_v29 = vpop.xlane.xlu1 %298 }
  0xa6   : > { %v293_v30 = vpop.xlane.xlu0 %292  ;;  %v303_v33 = vmul.f32 0.00390625, %v299_v29  ;;  %v1112_v29 = vpack.c.bf16 %v1039_v28, %v1037_v27  ;;  %v393_v27 = vld [vmem:[%s1785_s4 + $0x8] sm:$0xff]  ;;  %v394_v28 = vld [vmem:[%s1785_s4 + $0x10] sm:$0xff] }
  0xa7   : > { %v301_v34 = vmul.f32 0.00390625, %v293_v30  ;;  %v1036_v30 = vld [vmem:[%s1786_s5 + $0x300] sm:$0xff] }
  0xa8   : > { %v1076_v36 = vpack.c.bf16 %v303_v33, %v302_v31  ;;  %v1038_v31 = vld [vmem:[%s1786_s5 + $0x310] sm:$0xff]  ;;  %v1041_v33 = vld [vmem:[%s1786_s5 + $0x328] sm:$0xff] }
  0xa9   : > { %v1072_v35 = vpack.c.bf16 %v301_v34, %v300_v32  ;;  %v1114_v32 = vpack.c.bf16 %v1038_v31, %v1036_v30  ;;  %v1043_v34 = vld [vmem:[%s1786_s5 + $0x338] sm:$0xff]  ;;  %v593_v30 = vrot.slane %v1337_v23, 4 }
  0xab   : > { %1073 = vmatprep.subr.bf16.mxu0 %v1072_v35  ;;  %v594_v31 = vadd.f32 %v593_v30, %v1337_v23  ;;  %v622_v23 = vld [vmem:[%s1786_s5 + $0x10] sm:$0xff]  ;;  %v648_v30 = vld [vmem:[%s1786_s5 + $0xe0] sm:$0xff] }
  0xac   : > { %1075 = vmatpush1.bf16.msra.mxu0 %v1072_v35  ;;  %v1116_v35 = vpack.c.bf16 %v1043_v34, %v1041_v33 }
  0xad   : > { %1077 = vmatprep.subr.bf16.mxu0 %v1076_v36 }
  0xb0   : > { %1079 = vmatpush1.bf16.msra.mxu0 %v1076_v36  ;;  %v1040_v36 = vld [vmem:[%s1786_s5 + $0x320] sm:$0xff] }
  0xb1   : > { %1081 = vmatprep.subr.bf16.mxu0 %v1080_v40  ;;  %v1047_v40 = vld [vmem:[%s1786_s5 + $0x358] sm:$0xff] }
  0xb2   : > { %v1120_v41 = vpack.c.bf16 %v1047_v40, %v1045_v39  ;;  %v620_v40 = vld [vmem:[%s1786_s5] sm:$0xff] }
  0xb3   : > { %997 = vmatmul.mubr.msk.f32.vlgmr.msra.gmra.mrb[0].mxu0 %vm311_vm0, %v304_v37  ;;  %v1042_v37 = vld [vmem:[%s1786_s5 + $0x330] sm:$0xff] }
  0xb4   : > { %1083 = vmatpush1.bf16.msra.mxu0 %v1082_v43  ;;  %v1118_v38 = vpack.c.bf16 %v1042_v37, %v1040_v36  ;;  %v1046_v43 = vld [vmem:[%s1786_s5 + $0x350] sm:$0xff]  ;;  %v621_v36 = vld [vmem:[%s1786_s5 + $0x8] sm:$0xff]  ;;  %v623_v37 = vld [vmem:[%s1786_s5 + $0x18] sm:$0xff] }
  0xb5   : > { %1085 = vmatprep.subr.bf16.mxu0 %v1084_v46  ;;  %v1122_v44 = vpack.c.bf16 %v1046_v43, %v1044_v42  ;;  %v1051_v46 = vld [vmem:[%s1786_s5 + $0x378] sm:$0xff] }
  0xb6   : > { %v1124_v47 = vpack.c.bf16 %v1051_v46, %v1049_v45  ;;  %v627_v42 = vld [vmem:[%s1786_s5 + $0x38] sm:$0xff]  ;;  %v388_v46 = vld [vmem:[%s1784_s3] sm:$0xff] }
  0xb8   : > { %1087 = vmatpush1.bf16.msra.mxu0 %v1086_v49  ;;  %v1050_v49 = vld [vmem:[%s1786_s5 + $0x370] sm:$0xff] }
  0xb9   : > { %1089 = vmatprep.subr.bf16.mxu0 %v1088_v52  ;;  %v1126_v50 = vpack.c.bf16 %v1050_v49, %v1048_v48  ;;  %v1055_v52 = vld [vmem:[%s1786_s5 + $0x398] sm:$0xff] }
  0xba   : > { %v1128_v53 = vpack.c.bf16 %v1055_v52, %v1053_v51  ;;  %v626_v51 = vld [vmem:[%s1786_s5 + $0x30] sm:$0xff]  ;;  %v629_v52 = vld [vmem:[%s1786_s5 + $0x48] sm:$0xff] }
  0xbc   : > { %1091 = vmatpush1.bf16.msra.mxu0 %v1090_v55  ;;  %v1054_v55 = vld [vmem:[%s1786_s5 + $0x390] sm:$0xff] }
  0xbd   : > { %1093 = vmatprep.subr.bf16.mxu0 %v1092_v58  ;;  %v1130_v56 = vpack.c.bf16 %v1054_v55, %v1052_v54  ;;  %v1057_v58 = vld [vmem:[%s1786_s5 + $0x3a8] sm:$0xff] }
  0xbe   : > { %v1132_v60 = vpack.c.bf16 %v1059_v59, %v1057_v58  ;;  %v389_v55 = vld [vmem:[%s1784_s3 + $0x8] sm:$0xff]  ;;  %v628_v58 = vld [vmem:[%s1786_s5 + $0x40] sm:$0xff]  ;;  %v630_v59 = vld [vmem:[%s1786_s5 + $0x50] sm:$0xff] }
  0xc0   : > { %1095 = vmatpush1.bf16.msra.mxu0 %v1094_v61  ;;  %v1056_v61 = vld [vmem:[%s1786_s5 + $0x3a0] sm:$0xff] }
  0xc1   : > { %1097 = vmatprep.subr.bf16.mxu0 %v1096_v0  ;;  %v1134_v63 = vpack.c.bf16 %v1058_v62, %v1056_v61  ;;  %v614_v0 = vrot.slane %v1333_v21, 4  ;;  %v635_v61 = vld [vmem:[%s1786_s5 + $0x78] sm:$0xff]  ;;  %v1154_v62 = vpack.c.bf16 %v630_v59, %v628_v58 }
  0xc3   : > { %v615_v4 = vmax.f32 %v1333_v21, %v614_v0  ;;  %v1067_v21 = vld [vmem:[%s1786_s5 + $0x3f8] sm:$0xff] }
  0xc4   : > { %1099 = vmatpush1.bf16.msra.mxu0 %v1098_v3  ;;  %v1063_v3 = vld [vmem:[%s1786_s5 + $0x3d8] sm:$0xff] }
  0xc5   : > { %1101 = vmatprep.subr.bf16.mxu0 %v1100_v6  ;;  %v1136_v5 = vpack.c.bf16 %v1063_v3, %v1061_v2  ;;  %v1060_v6 = vld [vmem:[%s1786_s5 + $0x3c0] sm:$0xff]  ;;  %v616_v8 = vrot.slane %v615_v4, 2  ;;  %v634_v3 = vld [vmem:[%s1786_s5 + $0x70] sm:$0xff] }
  0xc6   : > { %v1138_v7 = vpack.c.bf16 %v1062_v20, %v1060_v6  ;;  %v632_v2 = vld [vmem:[%s1786_s5 + $0x60] sm:$0xff]  ;;  %v391_v20 = vld [vmem:[%s1784_s3 + $0x18] sm:$0xff] }
  0xc7   : > { %v617_v11 = vmax.f32 %v615_v4, %v616_v8  ;;  %v637_v4 = vld [vmem:[%s1786_s5 + $0x88] sm:$0xff]  ;;  %v1158_v6 = vpack.c.bf16 %v634_v3, %v632_v2  ;;  %v672_v3 = vld [vmem:[%s1786_s5 + $0x1a0] sm:$0xff] }
  0xc8   : > { %1103 = vmatpush1.bf16.msra.mxu0 %v1102_v9  ;;  %v607_v9 = vrot.slane %v606_v1, 2 }
  0xc9   : > { %1105 = vmatprep.subr.bf16.mxu0 %v1104_v12  ;;  %v1140_v12 = vpack.c.bf16 %v1067_v21, %v1065_v10  ;;  %v618_v17 = vrot.slane %v617_v11, 1  ;;  %v638_v10 = vld [vmem:[%s1786_s5 + $0x90] sm:$0xff]  ;;  %v641_v21 = vld [vmem:[%s1786_s5 + $0xa8] sm:$0xff] }
  0xcb   : > { %v619_v19 = vmax.f32 %v617_v11, %v618_v17  ;;  %v1166_v17 = vpack.c.bf16 %v642_v14, %v640_v13  ;;  %v680_v14 = vld [vmem:[%s1786_s5 + $0x1e0] sm:$0xff] }
  0xcc   : > { %1107 = vmatpush1.bf16.msra.mxu0 %v1106_v15  ;;  %v608_v15 = vmax.f32 %v606_v1, %v607_v9  ;;  %v636_v9 = vld [vmem:[%s1786_s5 + $0x80] sm:$0xff] }
  0xcd   : > { %1109 = vmatprep.subr.bf16.mxu0 %v1108_v18  ;;  %813 = vmatprep.mubr.f32.mxu0 %v619_v19  ;;  %v1162_v11 = vpack.c.bf16 %v638_v10, %v636_v9  ;;  %v644_v19 = vld [vmem:[%s1786_s5 + $0xc0] sm:$0xff]  ;;  %v678_v10 = vld [vmem:[%s1786_s5 + $0x1d0] sm:$0xff] }
  0xce   : > { %v609_v18 = vrot.slane %v608_v15, 1  ;;  %v676_v9 = vld [vmem:[%s1786_s5 + $0x1c0] sm:$0xff] }
  0xd0   : > { %1111 = vmatpush1.bf16.msra.mxu0 %v1110_v26  ;;  %v610_v25 = vmax.f32 %v608_v15, %v609_v18  ;;  %v392_v26 = vld [vmem:[%s1785_s4] sm:$0xff]  ;;  %v645_v15 = vld [vmem:[%s1786_s5 + $0xc8] sm:$0xff] }
  0xd1   : > { %1113 = vmatprep.subr.bf16.mxu0 %v1112_v29  ;;  %398 = vperm.xlu1 %1221, %v392_v26   ;;  %v395_v29 = vld [vmem:[%s1785_s4 + $0x18] sm:$0xff]  ;;  %v649_v26 = vld [vmem:[%s1786_s5 + $0xe8] sm:$0xff] }
  0xd4   : > { %1115 = vmatpush1.bf16.msra.mxu0 %v1114_v32  ;;  %v309_v32 = vpop.permute.xlu0 %308 }
  0xd5   : > { %1117 = vmatprep.subr.bf16.mxu0 %v1116_v35  ;;  %403 = vperm.xlu1 %1221, %v393_v27   ;;  %v651_v27 = vld [vmem:[%s1786_s5 + $0xf8] sm:$0xff] }
  0xd8   : > { %1119 = vmatpush1.bf16.msra.mxu0 %v1118_v38  ;;  %v595_v38 = vrot.slane %v594_v31, 2 }
  0xd9   : > { %1121 = vmatprep.subr.bf16.mxu0 %v1120_v41  ;;  %408 = vperm.xlu1 %1221, %v394_v28   ;;  %v625_v41 = vld [vmem:[%s1786_s5 + $0x28] sm:$0xff] }
  0xda   : > { %v596_v48 = vadd.f32 %v595_v38, %v594_v31  ;;  %v1148_v49 = vpack.c.bf16 %v627_v42, %v625_v41  ;;  %v650_v31 = vld [vmem:[%s1786_s5 + $0xf0] sm:$0xff]  ;;  %v657_v38 = vld [vmem:[%s1786_s5 + $0x128] sm:$0xff]  ;;  %v656_v41 = vld [vmem:[%s1786_s5 + $0x120] sm:$0xff] }
  0xdb   : > { %v658_v42 = vld [vmem:[%s1786_s5 + $0x130] sm:$0xff] }
  0xdc   : > { %1123 = vmatpush1.bf16.msra.mxu0 %v1122_v44  ;;  %v1144_v44 = vpack.c.bf16 %v623_v37, %v621_v36  ;;  %v652_v36 = vld [vmem:[%s1786_s5 + $0x100] sm:$0xff]  ;;  %v654_v37 = vld [vmem:[%s1786_s5 + $0x110] sm:$0xff] }
  0xdd   : > { %1125 = vmatprep.subr.bf16.mxu0 %v1124_v47  ;;  %413 = vperm.xlu1 %1221, %v395_v29   ;;  %v1146_v47 = vpack.c.bf16 %v622_v23, %v620_v40  ;;  %v1172_v29 = vpack.c.bf16 %v651_v27, %v649_v26  ;;  %v1178_v40 = vpack.c.bf16 %v654_v37, %v652_v36 }
  0xe0   : > { %1127 = vmatpush1.bf16.msra.mxu0 %v1126_v50  ;;  %v624_v50 = vld [vmem:[%s1786_s5 + $0x20] sm:$0xff] }
  0xe1   : > { %1129 = vmatprep.subr.bf16.mxu0 %v1128_v53  ;;  %v631_v53 = vld [vmem:[%s1786_s5 + $0x58] sm:$0xff]  ;;  %v1150_v54 = vpack.c.bf16 %v626_v51, %v624_v50  ;;  %v584_v51 = vrot.slane %v1335_v22, 4 }
  0xe2   : > { %v1152_v57 = vpack.c.bf16 %v631_v53, %v629_v52  ;;  %v667_v50 = vld [vmem:[%s1786_s5 + $0x178] sm:$0xff] }
  0xe3   : > { %v585_v58 = vadd.f32 %v584_v51, %v1335_v22  ;;  %v675_v22 = vld [vmem:[%s1786_s5 + $0x1b8] sm:$0xff] }
  0xe4   : > { %1131 = vmatpush1.bf16.msra.mxu0 %v1130_v56  ;;  %v597_v56 = vrot.slane %v596_v48, 1 }
  0xe5   : > { %1133 = vmatprep.subr.bf16.mxu0 %v1132_v60  ;;  %v633_v60 = vld [vmem:[%s1786_s5 + $0x68] sm:$0xff] }
  0xe6   : > { %v598_v0 = vadd.f32 %v597_v56, %v596_v48  ;;  %v1156_v1 = vpack.c.bf16 %v635_v61, %v633_v60  ;;  %v662_v48 = vld [vmem:[%s1786_s5 + $0x150] sm:$0xff]  ;;  %v669_v56 = vld [vmem:[%s1786_s5 + $0x188] sm:$0xff]  ;;  %v668_v61 = vld [vmem:[%s1786_s5 + $0x180] sm:$0xff] }
  0xe8   : > { %1135 = vmatpush1.bf16.msra.mxu0 %v1134_v63  ;;  %v390_v63 = vld [vmem:[%s1784_s3 + $0x10] sm:$0xff] }
  0xe9   : > { %1137 = vmatprep.subr.bf16.mxu0 %v1136_v5  ;;  %v639_v5 = vld [vmem:[%s1786_s5 + $0x98] sm:$0xff] }
  0xea   : > { %v1160_v8 = vpack.c.bf16 %v639_v5, %v637_v4  ;;  %v674_v4 = vld [vmem:[%s1786_s5 + $0x1b0] sm:$0xff]  ;;  %v677_v5 = vld [vmem:[%s1786_s5 + $0x1c8] sm:$0xff] }
  0xec   : > { %1139 = vmatpush1.bf16.msra.mxu0 %v1138_v7  ;;  %v601_v7 = vmul.f32 0.03125, %v598_v0  ;;  %v586_v0 = vrot.slane %v585_v58, 2 }
  0xed   : > { %1141 = vmatprep.subr.bf16.mxu0 %v1140_v12 }
  0xf0   : > { %1143 = vmatpush1.bf16.msra.mxu0 %v1142_v16  ;;  %v647_v16 = vld [vmem:[%s1786_s5 + $0xd8] sm:$0xff] }
  0xf1   : > { %v1168_v18 = vpack.c.bf16 %v647_v16, %v645_v15  ;;  %v682_v15 = vld [vmem:[%s1786_s5 + $0x1f0] sm:$0xff] }
  0xf3   : > { %814 = vmatmul.mubr.f32.vlgmr.msra.gmra.mrb[2].mxu0 %v610_v25  ;;  %v646_v25 = vld [vmem:[%s1786_s5 + $0xd0] sm:$0xff] }
  0xf4   : > { %v1170_v28 = vpack.c.bf16 %v646_v25, %v644_v19 }
 0x186   : > { %v381_v33 = vpop.f32.mrb[0].mxu0 }
 0x187   : > { %v382_v34 = vadd.f32 %v381_v33, %v309_v32  ;;  %v383_v35 = vpop.f32.mrb[1].mxu0  ;;  %v655_v33 = vld [vmem:[%s1786_s5 + $0x118] sm:$0xff] }
 0x188   : > { %v384_v39 = vadd.f32 %v383_v35, %v309_v32  ;;  %v653_v32 = vld [vmem:[%s1786_s5 + $0x108] sm:$0xff] }
 0x189   : > { %v386_v45 = vmax.f32 %v382_v34, 0.0  ;;  %v1174_v34 = vpack.c.bf16 %v650_v31, %v648_v30  ;;  %v1176_v35 = vpack.c.bf16 %v655_v33, %v653_v32 }
 0x18a   : > { %v387_v43 = vmax.f32 %v384_v39, 0.0  ;;  %v659_v39 = vld [vmem:[%s1786_s5 + $0x138] sm:$0xff] }
 0x18b   : > { %v1180_v23 = vpack.c.bf16 %v659_v39, %v657_v38 }
 0x18c   : > { %998 = vmatprep.subr.msk.mxu1 %vm429_vm1, %v387_v43  ;;  %v661_v43 = vld [vmem:[%s1786_s5 + $0x148] sm:$0xff] }
 0x18d   : > { %999 = vmatpush1.msk.msra.mxu1 %vm429_vm1, %v386_v45  ;;  %v1182_v45 = vpack.c.bf16 %v658_v42, %v656_v41 }
 0x18e   : > { %1000 = vmatmul.mubr.msk.f32.vlgmr.msra.gmra.mrb[0].mxu1 %vm416_vm2, %v388_v46  ;;  %1145 = vmatprep.subr.bf16.mxu1 %v1144_v44  ;;  %v663_v44 = vld [vmem:[%s1786_s5 + $0x158] sm:$0xff] }
 0x18f   : > { %1147 = vmatpush1.bf16.msra.mxu1 %v1146_v47  ;;  %506 = vmatprep.mubr.f32.mxu1 %v1270_v24  ;;  %v1184_v46 = vpack.c.bf16 %v663_v44, %v661_v43  ;;  %v660_v47 = vld [vmem:[%s1786_s5 + $0x140] sm:$0xff] }
 0x190   : > { %1149 = vmatprep.subr.bf16.mxu1 %v1148_v49  ;;  %v665_v49 = vld [vmem:[%s1786_s5 + $0x168] sm:$0xff]  ;;  %v1186_v52 = vpack.c.bf16 %v662_v48, %v660_v47 }
 0x191   : > { %v1188_v53 = vpack.c.bf16 %v667_v50, %v665_v49 }
 0x192   : > { %1001 = vmatmul.mubr.msk.f32.gmra.mrb[2].mxu1 %vm416_vm2, %v389_v55  ;;  %v666_v55 = vld [vmem:[%s1786_s5 + $0x170] sm:$0xff] }
 0x193   : > { %1151 = vmatpush1.bf16.msra.mxu1 %v1150_v54  ;;  %512 = vmatprep.mubr.f32.mxu1 %v1270_v24  ;;  %v664_v54 = vld [vmem:[%s1786_s5 + $0x160] sm:$0xff] }
 0x194   : > { %1153 = vmatprep.subr.bf16.mxu1 %v1152_v57  ;;  %v671_v57 = vld [vmem:[%s1786_s5 + $0x198] sm:$0xff]  ;;  %v1190_v59 = vpack.c.bf16 %v666_v55, %v664_v54 }
 0x195   : > { %v1192_v60 = vpack.c.bf16 %v671_v57, %v669_v56 }
 0x196   : > { %1002 = vmatmul.mubr.msk.f32.gmra.mrb[4].mxu1 %vm416_vm2, %v390_v63  ;;  %v673_v63 = vld [vmem:[%s1786_s5 + $0x1a8] sm:$0xff] }
 0x197   : > { %1155 = vmatpush1.bf16.msra.mxu1 %v1154_v62  ;;  %518 = vmatprep.mubr.f32.mxu1 %v1270_v24  ;;  %v643_v24 = vld [vmem:[%s1786_s5 + $0xb8] sm:$0xff]  ;;  %v670_v62 = vld [vmem:[%s1786_s5 + $0x190] sm:$0xff]  ;;  %v1196_v2 = vpack.c.bf16 %v675_v22, %v673_v63 }
 0x198   : > { %1157 = vmatprep.subr.bf16.mxu1 %v1156_v1  ;;  %v1164_v12 = vpack.c.bf16 %v643_v24, %v641_v21  ;;  %v1194_v1 = vpack.c.bf16 %v670_v62, %v668_v61  ;;  %v681_v21 = vld [vmem:[%s1786_s5 + $0x1e8] sm:$0xff]  ;;  %v683_v24 = vld [vmem:[%s1786_s5 + $0x1f8] sm:$0xff] }
 0x199   : > { %v1204_v13 = vpack.c.bf16 %v683_v24, %v681_v21 }
 0x19a   : > { %1003 = vmatmul.mubr.msk.f32.gmra.mrb[6].mxu1 %vm416_vm2, %v391_v20  ;;  %v587_v20 = vadd.f32 %v586_v0, %v585_v58 }
 0x19b   : > { %1159 = vmatpush1.bf16.msra.mxu1 %v1158_v6  ;;  %884 = vmatprep.mubr.f32.mxu1 %v601_v7  ;;  %v679_v6 = vld [vmem:[%s1786_s5 + $0x1d8] sm:$0xff]  ;;  %v1198_v7 = vpack.c.bf16 %v674_v4, %v672_v3 }
 0x19c   : > { %1161 = vmatprep.subr.bf16.mxu1 %v1160_v8  ;;  %v1200_v8 = vpack.c.bf16 %v679_v6, %v677_v5 }
 0x19f   : > { %1163 = vmatpush1.bf16.msra.mxu1 %v1162_v11  ;;  %v588_v11 = vrot.slane %v587_v20, 1 }
 0x1a0   : > { %1165 = vmatprep.subr.bf16.mxu1 %v1164_v12  ;;  %v1202_v12 = vpack.c.bf16 %v678_v10, %v676_v9 }
 0x1a1   : > { %v589_v16 = vadd.f32 %v588_v11, %v587_v20 }
 0x1a3   : > { %1167 = vmatpush1.bf16.msra.mxu1 %v1166_v17  ;;  %v1206_v17 = vpack.c.bf16 %v682_v15, %v680_v14 }
 0x1a4   : > { %1169 = vmatprep.subr.bf16.mxu1 %v1168_v18  ;;  %v600_v18 = vmul.f32 0.03125, %v589_v16 }
 0x1a7   : > { %1171 = vmatpush1.bf16.msra.mxu1 %v1170_v28 }
 0x1a8   : > { %1173 = vmatprep.subr.bf16.mxu1 %v1172_v29 }
 0x1ab   : > { %1175 = vmatpush1.bf16.msra.mxu1 %v1174_v34  ;;  %v399_v34 = vpop.permute.xlu1 %398 }
 0x1ac   : > { %1177 = vmatprep.subr.bf16.mxu1 %v1176_v35 }
 0x1af   : > { %1179 = vmatpush1.bf16.msra.mxu1 %v1178_v40  ;;  %v404_v35 = vpop.permute.xlu1 %403 }
 0x1b0   : > { %1181 = vmatprep.subr.bf16.mxu1 %v1180_v23 }
 0x1b3   : > { %1183 = vmatpush1.bf16.msra.mxu1 %v1182_v45  ;;  %v409_v36 = vpop.permute.xlu1 %408 }
 0x1b4   : > { %1185 = vmatprep.subr.bf16.mxu1 %v1184_v46 }
 0x1b7   : > { %1187 = vmatpush1.bf16.msra.mxu1 %v1186_v52  ;;  %v414_v23 = vpop.permute.xlu1 %413 }
 0x1b8   : > { %1189 = vmatprep.subr.bf16.mxu1 %v1188_v53 }
 0x1bb   : > { %1191 = vmatpush1.bf16.msra.mxu1 %v1190_v59 }
 0x1bc   : > { %1193 = vmatprep.subr.bf16.mxu1 %v1192_v60 }
 0x1bf   : > { %1195 = vmatpush1.bf16.msra.mxu1 %v1194_v1  ;;  %v892_v1 = vstv %s1770_s11 }
 0x1c0   : > { %1197 = vmatprep.subr.bf16.mxu1 %v1196_v2 }
 0x1c3   : > { %1199 = vmatpush1.bf16.msra.mxu1 %v1198_v7 }
 0x1c4   : > { %1201 = vmatprep.subr.bf16.mxu1 %v1200_v8 }
 0x1c6   : > { %v815_v19 = vpop.f32.mrb[2].mxu0 }
 0x1c7   : > { %1203 = vmatpush1.bf16.msra.mxu1 %v1202_v12  ;;  %v817_v25 = vpop.f32.mrb[3].mxu0 }
 0x1c8   : > { %1205 = vmatprep.subr.bf16.mxu1 %v1204_v13 }
 0x1cb   : > { %1207 = vmatpush1.bf16.msra.mxu1 %v1206_v17 }
 0x1ce   : > { %885 = vmatmul.mubr.f32.vlgmr.msra.gmra.mrb[8].mxu1 %v600_v18 }
 0x261   : > { %v502_v26 = vpop.f32.mrb[0].mxu1 }
 0x262   : > { %v504_v27 = vpop.f32.mrb[1].mxu1  ;;  %v503_v37 = vadd.f32 %v502_v26, %v399_v34 }
 0x263   : > { %v505_v38 = vadd.f32 %v504_v27, %v399_v34 }
 0x264   : > { %v525_v41 = vmul.f32 2.0, %v503_v37  ;;  %v909_v37 = vlaneseq }
 0x265   : > { %v508_v28 = vpop.f32.mrb[2].mxu1  ;;  %v526_v43 = vmul.f32 2.0, %v505_v38 }
 0x266   : > { %v510_v29 = vpop.f32.mrb[3].mxu1  ;;  %v509_v39 = vadd.f32 %v508_v28, %v404_v35  ;;  %v533_v49 = vsub.f32 0.0, %v525_v41  ;;  %v910_v38 = vshrl.u32 %v909_v37, 7 }
 0x267   : > { %v511_v40 = vadd.f32 %v510_v29, %v404_v35  ;;  %v534_v51 = vsub.f32 0.0, %v526_v43 }
 0x268   : > { %v527_v45 = vmul.f32 2.0, %v509_v39  ;;  %v541_v57 = vmul.f32 1.442695, %v533_v49 }
 0x269   : > { %v514_v30 = vpop.f32.mrb[4].mxu1  ;;  %v528_v47 = vmul.f32 2.0, %v511_v40  ;;  %v543_v59 = vmul.f32 1.442695, %v534_v51 }
 0x26a   : > { %v516_v31 = vpop.f32.mrb[5].mxu1  ;;  %v515_v42 = vadd.f32 %v514_v30, %v409_v36  ;;  %v535_v53 = vsub.f32 0.0, %v527_v45  ;;  %1222 = vpow2.f32 %v541_v57 }
 0x26b   : > { %v517_v44 = vadd.f32 %v516_v31, %v409_v36  ;;  %v536_v55 = vsub.f32 0.0, %v528_v47  ;;  %1224 = vpow2.f32 %v543_v59 }
 0x26c   : > { %v529_v50 = vmul.f32 2.0, %v515_v42  ;;  %v545_v61 = vmul.f32 1.442695, %v535_v53  ;;  %v911_v42 = vsub.s32 0, %v910_v38 }
 0x26d   : > { %v520_v32 = vpop.f32.mrb[6].mxu1  ;;  %v530_v52 = vmul.f32 2.0, %v517_v44  ;;  %v547_v63 = vmul.f32 1.442695, %v536_v55 }
 0x26e   : > { %v522_v33 = vpop.f32.mrb[7].mxu1  ;;  %v521_v46 = vadd.f32 %v520_v32, %v414_v23  ;;  %v537_v58 = vsub.f32 0.0, %v529_v50  ;;  %1226 = vpow2.f32 %v545_v61 }
 0x26f   : > { %v523_v48 = vadd.f32 %v522_v33, %v414_v23  ;;  %v538_v60 = vsub.f32 0.0, %v530_v52  ;;  %1228 = vpow2.f32 %v547_v63 }
 0x270   : > { %v531_v54 = vmul.f32 2.0, %v521_v46  ;;  %v549_v2 = vmul.f32 1.442695, %v537_v58 }
 0x271   : > { %v532_v56 = vmul.f32 2.0, %v523_v48  ;;  %v551_v5 = vmul.f32 1.442695, %v538_v60 }
 0x272   : > { %v539_v62 = vsub.f32 0.0, %v531_v54  ;;  %1230 = vpow2.f32 %v549_v2 }
 0x273   : > { %v540_v22 = vsub.f32 0.0, %v532_v56  ;;  %1232 = vpow2.f32 %v551_v5 }
 0x274   : > { %v553_v20 = vmul.f32 1.442695, %v539_v62  ;;  %v1223_v12 = vpop.eup %1222 }
 0x275   : > { %v555_v8 = vmul.f32 1.442695, %v540_v22  ;;  %v1225_v13 = vpop.eup %1224  ;;  %v557_v16 = vadd.f32 1.0, %v1223_v12 }
 0x276   : > { %1234 = vpow2.f32 %v553_v20  ;;  %v558_v18 = vadd.f32 1.0, %v1225_v13 }
 0x277   : > { %1236 = vpow2.f32 %v555_v8 }
 0x278   : > { %v1227_v14 = vpop.eup %1226 }
 0x279   : > { %v1229_v15 = vpop.eup %1228 }
 0x27a   : > { %v560_v27 = vadd.f32 1.0, %v1229_v15 }
 0x27c   : > { %v1231_v17 = vpop.eup %1230 }
 0x27d   : > { %v561_v31 = vadd.f32 1.0, %v1231_v17 }
 0x2a1   : > { %v886_v0 = vpop.f32.mrb[8].mxu1 }
 0x2a2   : > { %v887_v3 = vadd.f32 %v886_v0, %v815_v19  ;;  %v888_v4 = vpop.f32.mrb[9].mxu1  ;;  %v1233_v19 = vpop.eup %1232 }
 0x2a3   : > { %v889_v6 = vadd.f32 %v888_v4, %v817_v25  ;;  %v559_v25 = vadd.f32 1.0, %v1227_v14  ;;  %v1235_v26 = vpop.eup %1234  ;;  %v562_v33 = vadd.f32 1.0, %v1233_v19 }
 0x2a4   : > { %v893_v7 = vadd.f32 %v892_v1, %v887_v3  ;;  %v1237_v28 = vpop.eup %1236  ;;  %v563_v35 = vadd.f32 1.0, %v1235_v26 }
 0x2a5   : > { %v894_v9 = vadd.f32 %v892_v1, %v889_v6  ;;  %v564_v36 = vadd.f32 1.0, %v1237_v28 }
 0x2a6   : > { %v895_v10 = vsub.f32 0.0, %v893_v7 }
 0x2a7   : > { %v896_v21 = vsub.f32 0.0, %v894_v9 }
 0x2a8   : > { %v897_v24 = vmul.f32 1.442695, %v895_v10 }
 0x2a9   : > { %v899_v11 = vmul.f32 1.442695, %v896_v21 }
 0x2aa   : > { %1238 = vpow2.f32 %v897_v24 }
 0x2ab   : > { %1240 = vpow2.f32 %v899_v11 }
 0x2ac   : > { %1242 = vrcp.f32 %v557_v16 }
 0x2ad   : > { %1244 = vrcp.f32 %v558_v18 }
 0x2ae   : > { %1246 = vrcp.f32 %v559_v25 }
 0x2af   : > { %1248 = vrcp.f32 %v560_v27 }
 0x2b4   : > { %v1239_v29 = vpop.eup %1238 }
 0x2b5   : > { %v1241_v30 = vpop.eup %1240  ;;  %v901_v32 = vadd.f32 1.0, %v1239_v29 }
 0x2b6   : > { %v902_v34 = vadd.f32 1.0, %v1241_v30  ;;  %v1243_v39 = vpop.eup %1242 }
 0x2b7   : > { %1250 = vrcp.f32 %v901_v32  ;;  %v1245_v40 = vpop.eup %1244 }
 0x2b8   : > { %1252 = vrcp.f32 %v902_v34  ;;  %v1247_v23 = vpop.eup %1246 }
 0x2b9   : > { %1254 = vrcp.f32 %v561_v31  ;;  %v1249_v41 = vpop.eup %1248 }
 0x2ba   : > { %1256 = vrcp.f32 %v562_v33 }
 0x2bb   : > { %1258 = vrcp.f32 %v563_v35 }
 0x2bc   : > { %1260 = vrcp.f32 %v564_v36 }
 0x2c1   : > { %v1251_v43 = vpop.eup %1250 }
 0x2c2   : > { %v1253_v44 = vpop.eup %1252  ;;  %v907_v45 = vmul.f32 %v1251_v43, %v893_v7 }
 0x2c3   : > { %v1255_v46 = vpop.eup %1254  ;;  %v908_v47 = vmul.f32 %v1253_v44, %v894_v9 }
 0x2c4   : > { %v1257_v48 = vpop.eup %1256  ;;  %v912_v49 = vrot.slane %v907_v45, %v911_v42 }
 0x2c5   : > { %v1259_v50 = vpop.eup %1258  ;;  %v916_v51 = vrot.slane %v908_v47, %v911_v42 }
 0x2c6   : > { %v1261_v52 = vpop.eup %1260  ;;  %v917_v53 = vadd.f32 %v1243_v39, %v912_v49  ;;  %v919_v54 = vadd.f32 %v1247_v23, %v912_v49  ;;  %v921_v55 = vadd.f32 %v1255_v46, %v912_v49  ;;  %v923_v56 = vadd.f32 %v1259_v50, %v912_v49 }
 0x2c7   : > { %v918_v57 = vadd.f32 %v1245_v40, %v916_v51  ;;  %v920_v58 = vadd.f32 %v1249_v41, %v916_v51  ;;  %v922_v59 = vadd.f32 %v1257_v48, %v916_v51  ;;  %v924_v60 = vadd.f32 %v1261_v52, %v916_v51 }
 0x2c8   : > { %925 = vst [vmem:[%s279_s14] sm:$0xff] %v917_v53  ;;  %927 = vst [vmem:[%s279_s14 + $0x10] sm:$0xff] %v919_v54 }
 0x2c9   : > { %929 = vst [vmem:[%s279_s14 + $0x20] sm:$0xff] %v921_v55  ;;  %931 = vst [vmem:[%s279_s14 + $0x30] sm:$0xff] %v923_v56 }
 0x2ca   : > { %926 = vst [vmem:[%s279_s14 + $0x8] sm:$0xff] %v918_v57  ;;  %928 = vst [vmem:[%s279_s14 + $0x18] sm:$0xff] %v920_v58 }
 0x2cb   : > { %930 = vst [vmem:[%s279_s14 + $0x28] sm:$0xff] %v922_v59  ;;  %932 = vst [vmem:[%s279_s14 + $0x38] sm:$0xff] %v924_v60 }
 0x2cc PF: > { %s18_s26 = sadd.s32 1, %s1268_s26  }
 0x2cd   : > { %p15_p4 = scmp.ge.s32.totalorder %s18_s26, 4  }
 0x2cf   :  { %17 = sbr.rel (!%p15_p4) target bundleno = 2 (0x2), region = 79 }

</bundles_post_ra>
